<compile_context>
chip_gen: v6e
topology: v6e:2x2x1
jax: 0.10.0
libtpu: 0.0.40
codegen_flags: <defaults>
</compile_context>

<pallas_src>
import math

import jax
import jax.numpy as jnp
from jax.experimental import pallas as pl
from jax.experimental.pallas import tpu as pltpu

# Small shapes consistent with the module (toy stand-in for seq<=128, hidden=768).
# H kept a multiple of 128 for lane-dense layout.
B, S, H, F_FFN, VOCAB = 2, 8, 128, 256, 64
INV_SQRT_H = 1.0 / math.sqrt(H)


def _layernorm(x, gamma, beta, eps=1e-5):
    mu = jnp.mean(x, axis=-1, keepdims=True)
    var = jnp.mean((x - mu) ** 2, axis=-1, keepdims=True)
    return (x - mu) * jax.lax.rsqrt(var + eps) * gamma + beta


def style_encoder_kernel(
    ids_ref,        # (B, S)    int32  SMEM (scalar prefetch)
    key_mask_ref,   # (1, 1, S) f32    this batch's key mask (block of (B,1,S))
    tok_mask_ref,   # (1, S, 1) f32    this batch's token mask (block of (B,S,1))
    emb_ref,        # (VOCAB, H) f32   embedding table, resident
    wqkv_ref,       # (H, 3H)  bf16    packed QKV weights (softmax scale folded into Q)
    wo_ref,         # (H, H)   bf16
    w1_ref,         # (H, F)   bf16
    w2_ref,         # (F, H)   bf16
    sp_ref,         # (8, 3H)  f32     packed biases / LayerNorm params
    pooled_ref,     # (1, 1, H) f32    this batch's pooled output
):
    b = pl.program_id(0)

    # ---- Fused embedding gather for this batch: 8 dynamic row loads. ----
    rows = [emb_ref[pl.ds(ids_ref[b, j], 1), :] for j in range(S)]
    x = jnp.concatenate(rows, axis=0)                    # (S, H) f32
    x_bf = x.astype(jnp.bfloat16)

    # ---- Unpack the consolidated small-parameter operand. ----
    sp = sp_ref[...]
    bqkv = sp[0:1, :]                                    # (1, 3H)
    bo = sp[1:2, 0:H]
    b1 = sp[2:3, 0:F_FFN]
    b2 = sp[3:4, 0:H]
    g1 = sp[4:5, 0:H]
    be1 = sp[5:6, 0:H]
    g2 = sp[6:7, 0:H]
    be2 = sp[7:8, 0:H]

    key_mask = key_mask_ref[0]                           # (1, S) f32
    tok_mask = tok_mask_ref[0]                           # (S, 1) f32
    attn_bias = (key_mask - 1.0) * 1e9                   # 0 where allowed, -1e9 where padded

    # ---- Packed QKV projection (one MXU pass, N = 3H). ----
    qkv = jnp.dot(x_bf, wqkv_ref[...],
                  preferred_element_type=jnp.float32) + bqkv
    q = qkv[:, 0:H]
    k = qkv[:, H:2 * H]
    v = qkv[:, 2 * H:3 * H]
    # NOTE: 1/sqrt(H) already folded into the Q columns of wqkv at init.

    # ---- Per-batch (S, S) attention with in-kernel key masking. ----
    scores = jnp.einsum("qd,kd->qk", q.astype(jnp.bfloat16), k.astype(jnp.bfloat16),
                        preferred_element_type=jnp.float32) + attn_bias
    scores = scores - jnp.max(scores, axis=-1, keepdims=True)
    p = jnp.exp(scores)
    attn = p * pl.reciprocal(jnp.sum(p, axis=-1, keepdims=True), approx=True)

    ctx = jnp.dot(attn.astype(jnp.bfloat16), v.astype(jnp.bfloat16),
                  preferred_element_type=jnp.float32)
    attn_out = jnp.dot(ctx.astype(jnp.bfloat16), wo_ref[...],
                       preferred_element_type=jnp.float32) + bo

    h = _layernorm(x + attn_out, g1, be1)

    # TODO(synk): HF BERT-style encoders use exact (erf) GELU; tanh approximation
    # kept here (synthetic weights, negligible deviation).
    ff = jnp.dot(h.astype(jnp.bfloat16), w1_ref[...],
                 preferred_element_type=jnp.float32) + b1
    ff = jax.nn.gelu(ff, approximate=True)
    ff = jnp.dot(ff.astype(jnp.bfloat16), w2_ref[...],
                 preferred_element_type=jnp.float32) + b2

    h2 = _layernorm(h + ff, g2, be2)                     # (S, H) f32

    # ---- Fused masked mean pooling (exact _mean_pooling semantics). ----
    summed = jnp.sum(h2 * tok_mask, axis=0, keepdims=True)          # (1, H)
    denom = jnp.maximum(jnp.sum(tok_mask, axis=0, keepdims=True), 1e-9)  # (1, 1)
    pooled_ref[...] = (summed / denom).reshape(1, 1, H)


def init_params(key):
    ks = jax.random.split(key, 7)
    s = 0.02
    emb = s * jax.random.normal(ks[0], (VOCAB, H), jnp.float32)
    # Fold the softmax scale 1/sqrt(H) into the Q projection.
    wq = s * jax.random.normal(ks[1], (H, H), jnp.float32) * INV_SQRT_H
    wk = s * jax.random.normal(ks[2], (H, H), jnp.float32)
    wv = s * jax.random.normal(ks[3], (H, H), jnp.float32)
    wqkv = jnp.concatenate([wq, wk, wv], axis=1).astype(jnp.bfloat16)
    wo = (s * jax.random.normal(ks[4], (H, H), jnp.float32)).astype(jnp.bfloat16)
    w1 = (s * jax.random.normal(ks[5], (H, F_FFN), jnp.float32)).astype(jnp.bfloat16)
    w2 = (s * jax.random.normal(ks[6], (F_FFN, H), jnp.float32)).astype(jnp.bfloat16)

    bqkv = jnp.zeros((3 * H,), jnp.float32)
    bo = jnp.zeros((H,), jnp.float32)
    b1 = jnp.zeros((F_FFN,), jnp.float32)
    b2 = jnp.zeros((H,), jnp.float32)
    g1 = jnp.ones((H,), jnp.float32)
    be1 = jnp.zeros((H,), jnp.float32)
    g2 = jnp.ones((H,), jnp.float32)
    be2 = jnp.zeros((H,), jnp.float32)

    # Pack the 8 tiny vectors into one (8, 3H) operand (one DMA instead of 8).
    small = jnp.zeros((8, 3 * H), jnp.float32)
    small = small.at[0, :].set(bqkv)
    small = small.at[1, :H].set(bo)
    small = small.at[2, :F_FFN].set(b1)
    small = small.at[3, :H].set(b2)
    small = small.at[4, :H].set(g1)
    small = small.at[5, :H].set(be1)
    small = small.at[6, :H].set(g2)
    small = small.at[7, :H].set(be2)

    return {
        "emb": emb, "wqkv": wqkv, "wo": wo, "w1": w1, "w2": w2,
        "bqkv": bqkv, "bo": bo, "b1": b1, "b2": b2,
        "g1": g1, "be1": be1, "g2": g2, "be2": be2,
        "small": small,
    }


@jax.jit
def style_encoder_forward(token_ids, attention_mask, params):
    """StyleEncoder.forward: encoder(tokens) -> masked mean pooled embedding [B, H]."""
    # TODO(synk): HF tokenizer + pretrained AutoModel weights are external; token
    # ids are taken as input and the encoder uses synthetic weights.
    maskf = attention_mask.astype(jnp.float32)           # (B, S)
    key_mask = maskf.reshape(B, 1, S)                    # per-batch key mask
    tok_mask = maskf.reshape(B, S, 1)                    # per-batch pooling mask

    grid_spec = pltpu.PrefetchScalarGridSpec(
        num_scalar_prefetch=1,                           # token_ids -> SMEM
        grid=(B,),
        in_specs=[
            pl.BlockSpec((1, 1, S), lambda b, ids: (b, 0, 0)),        # key_mask
            pl.BlockSpec((1, S, 1), lambda b, ids: (b, 0, 0)),        # tok_mask
            pl.BlockSpec((VOCAB, H), lambda b, ids: (0, 0)),          # emb (resident)
            pl.BlockSpec((H, 3 * H), lambda b, ids: (0, 0)),          # wqkv (resident)
            pl.BlockSpec((H, H), lambda b, ids: (0, 0)),              # wo
            pl.BlockSpec((H, F_FFN), lambda b, ids: (0, 0)),          # w1
            pl.BlockSpec((F_FFN, H), lambda b, ids: (0, 0)),          # w2
            pl.BlockSpec((8, 3 * H), lambda b, ids: (0, 0)),          # packed small params
        ],
        out_specs=pl.BlockSpec((1, 1, H), lambda b, ids: (b, 0, 0)),
    )

    pooled = pl.pallas_call(
        style_encoder_kernel,
        grid_spec=grid_spec,
        out_shape=jax.ShapeDtypeStruct((B, 1, H), jnp.float32),
        compiler_params=pltpu.CompilerParams(
            dimension_semantics=("parallel",),            # shard batch across v7x TCs
        ),
    )(token_ids, key_mask, tok_mask,
      params["emb"], params["wqkv"], params["wo"], params["w1"], params["w2"],
      params["small"])

    return pooled.reshape(B, H)


@jax.jit
def ref_forward(token_ids, attention_mask, params):
    """Pure-JAX f32 reference (same synthetic weights, same folded scale)."""
    x = params["emb"][token_ids]                         # (B, S, H) f32
    maskf = attention_mask.astype(jnp.float32)
    qkv = x @ params["wqkv"].astype(jnp.float32) + params["bqkv"]
    q, k, v = qkv[..., :H], qkv[..., H:2 * H], qkv[..., 2 * H:]
    scores = jnp.einsum("bqd,bkd->bqk", q, k)            # scale folded into Wq
    scores = scores + (maskf[:, None, :] - 1.0) * 1e9
    attn = jax.nn.softmax(scores, axis=-1)
    ctx = jnp.einsum("bqk,bkd->bqd", attn, v)
    attn_out = ctx @ params["wo"].astype(jnp.float32) + params["bo"]
    h = _layernorm(x + attn_out, params["g1"], params["be1"])
    ff = h @ params["w1"].astype(jnp.float32) + params["b1"]
    ff = jax.nn.gelu(ff, approximate=True)
    ff = ff @ params["w2"].astype(jnp.float32) + params["b2"]
    h2 = _layernorm(h + ff, params["g2"], params["be2"])
    m = maskf[:, :, None]
    return jnp.sum(h2 * m, axis=1) / jnp.maximum(jnp.sum(m, axis=1), 1e-9)


if __name__ == "__main__":
    key = jax.random.PRNGKey(0)
    k_param, k_tok = jax.random.split(key)

    params = init_params(k_param)
    token_ids = jax.random.randint(k_tok, (B, S), 0, VOCAB, dtype=jnp.int32)
    # Padded batch, like tokenizer(padding=True): second sentence is shorter.
    attention_mask = jnp.array(
        [[1, 1, 1, 1, 1, 1, 0, 0],
         [1, 1, 1, 1, 0, 0, 0, 0]], dtype=jnp.int32)

    emb = style_encoder_forward(token_ids, attention_mask, params)
    emb = jax.block_until_ready(emb)

    assert emb.shape == (B, H), emb.shape
    assert bool(jnp.all(jnp.isfinite(emb))), "non-finite values in output"

    ref = ref_forward(token_ids, attention_mask, params)
    err = float(jnp.max(jnp.abs(emb - ref)))
    assert bool(jnp.allclose(emb, ref, atol=3e-2, rtol=3e-2)), f"max abs err {err}"

    print("KERNEL_OK")
</pallas_src>

<mosaic_0001>
module attributes {stable_mosaic.version = 11 : i64} {
  func.func @style_encoder_kernel(%arg0: i32, %arg1: memref<2x8xi32, #tpu.memory_space<smem>>, %arg2: memref<1x1x8xf32, #tpu.memory_space<vmem>>, %arg3: memref<1x8x1xf32, #tpu.memory_space<vmem>>, %arg4: memref<64x128xf32, #tpu.memory_space<vmem>>, %arg5: memref<128x384xbf16, #tpu.memory_space<vmem>>, %arg6: memref<128x128xbf16, #tpu.memory_space<vmem>>, %arg7: memref<128x256xbf16, #tpu.memory_space<vmem>>, %arg8: memref<256x128xbf16, #tpu.memory_space<vmem>>, %arg9: memref<8x384xf32, #tpu.memory_space<vmem>>, %arg10: memref<1x1x128xf32, #tpu.memory_space<vmem>>) attributes {dimension_semantics = [#tpu.dimension_semantics<parallel>], iteration_bounds = array<i64: 2>, scalar_prefetch = 1 : i64, scratch_operands = 0 : i64, tpu.core_type = #tpu.core_type<tc>, window_params = [{transform_indices = @transform_0, window_bounds = array<i64: 1, 1, 8>}, {transform_indices = @transform_1, window_bounds = array<i64: 1, 8, 1>}, {pipeline_mode = #tpu.pipeline_mode<synchronous>, transform_indices = @transform_2, window_bounds = array<i64: 64, 128>}, {pipeline_mode = #tpu.pipeline_mode<synchronous>, transform_indices = @transform_3, window_bounds = array<i64: 128, 384>}, {pipeline_mode = #tpu.pipeline_mode<synchronous>, transform_indices = @transform_4, window_bounds = array<i64: 128, 128>}, {pipeline_mode = #tpu.pipeline_mode<synchronous>, transform_indices = @transform_5, window_bounds = array<i64: 128, 256>}, {pipeline_mode = #tpu.pipeline_mode<synchronous>, transform_indices = @transform_6, window_bounds = array<i64: 256, 128>}, {pipeline_mode = #tpu.pipeline_mode<synchronous>, transform_indices = @transform_7, window_bounds = array<i64: 8, 384>}, {transform_indices = @transform_8, window_bounds = array<i64: 1, 1, 128>}]} {
    %0 = arith.index_cast %arg0 : i32 to index
    %c0 = arith.constant 0 : index
    %1 = memref.load %arg1[%0, %c0] : memref<2x8xi32, #tpu.memory_space<smem>>
    %2 = arith.index_cast %1 : i32 to index
    %c0_0 = arith.constant 0 : index
    %3 = vector.load %arg4[%2, %c0_0] : memref<64x128xf32, #tpu.memory_space<vmem>>, vector<1x128xf32>
    %4 = arith.index_cast %arg0 : i32 to index
    %c1 = arith.constant 1 : index
    %5 = memref.load %arg1[%4, %c1] : memref<2x8xi32, #tpu.memory_space<smem>>
    %6 = arith.index_cast %5 : i32 to index
    %c0_1 = arith.constant 0 : index
    %7 = vector.load %arg4[%6, %c0_1] : memref<64x128xf32, #tpu.memory_space<vmem>>, vector<1x128xf32>
    %8 = arith.index_cast %arg0 : i32 to index
    %c2 = arith.constant 2 : index
    %9 = memref.load %arg1[%8, %c2] : memref<2x8xi32, #tpu.memory_space<smem>>
    %10 = arith.index_cast %9 : i32 to index
    %c0_2 = arith.constant 0 : index
    %11 = vector.load %arg4[%10, %c0_2] : memref<64x128xf32, #tpu.memory_space<vmem>>, vector<1x128xf32>
    %12 = arith.index_cast %arg0 : i32 to index
    %c3 = arith.constant 3 : index
    %13 = memref.load %arg1[%12, %c3] : memref<2x8xi32, #tpu.memory_space<smem>>
    %14 = arith.index_cast %13 : i32 to index
    %c0_3 = arith.constant 0 : index
    %15 = vector.load %arg4[%14, %c0_3] : memref<64x128xf32, #tpu.memory_space<vmem>>, vector<1x128xf32>
    %16 = arith.index_cast %arg0 : i32 to index
    %c4 = arith.constant 4 : index
    %17 = memref.load %arg1[%16, %c4] : memref<2x8xi32, #tpu.memory_space<smem>>
    %18 = arith.index_cast %17 : i32 to index
    %c0_4 = arith.constant 0 : index
    %19 = vector.load %arg4[%18, %c0_4] : memref<64x128xf32, #tpu.memory_space<vmem>>, vector<1x128xf32>
    %20 = arith.index_cast %arg0 : i32 to index
    %c5 = arith.constant 5 : index
    %21 = memref.load %arg1[%20, %c5] : memref<2x8xi32, #tpu.memory_space<smem>>
    %22 = arith.index_cast %21 : i32 to index
    %c0_5 = arith.constant 0 : index
    %23 = vector.load %arg4[%22, %c0_5] : memref<64x128xf32, #tpu.memory_space<vmem>>, vector<1x128xf32>
    %24 = arith.index_cast %arg0 : i32 to index
    %c6 = arith.constant 6 : index
    %25 = memref.load %arg1[%24, %c6] : memref<2x8xi32, #tpu.memory_space<smem>>
    %26 = arith.index_cast %25 : i32 to index
    %c0_6 = arith.constant 0 : index
    %27 = vector.load %arg4[%26, %c0_6] : memref<64x128xf32, #tpu.memory_space<vmem>>, vector<1x128xf32>
    %28 = arith.index_cast %arg0 : i32 to index
    %c7 = arith.constant 7 : index
    %29 = memref.load %arg1[%28, %c7] : memref<2x8xi32, #tpu.memory_space<smem>>
    %30 = arith.index_cast %29 : i32 to index
    %c0_7 = arith.constant 0 : index
    %31 = vector.load %arg4[%30, %c0_7] : memref<64x128xf32, #tpu.memory_space<vmem>>, vector<1x128xf32>
    %32 = tpu.concatenate %3, %7, %11, %15, %19, %23, %27, %31 in 0 : vector<1x128xf32>, vector<1x128xf32>, vector<1x128xf32>, vector<1x128xf32>, vector<1x128xf32>, vector<1x128xf32>, vector<1x128xf32>, vector<1x128xf32> -> vector<8x128xf32>
    %33 = arith.truncf %32 : vector<8x128xf32> to vector<8x128xbf16>
    %c0_8 = arith.constant 0 : index
    %c0_9 = arith.constant 0 : index
    %34 = vector.load %arg9[%c0_8, %c0_9] : memref<8x384xf32, #tpu.memory_space<vmem>>, vector<8x384xf32>
    %35 = vector.extract_strided_slice %34 {offsets = [0, 0], sizes = [1, 384], strides = [1, 1]} : vector<8x384xf32> to vector<1x384xf32>
    %36 = vector.extract_strided_slice %34 {offsets = [1, 0], sizes = [1, 128], strides = [1, 1]} : vector<8x384xf32> to vector<1x128xf32>
    %37 = vector.extract_strided_slice %34 {offsets = [2, 0], sizes = [1, 256], strides = [1, 1]} : vector<8x384xf32> to vector<1x256xf32>
    %38 = vector.extract_strided_slice %34 {offsets = [3, 0], sizes = [1, 128], strides = [1, 1]} : vector<8x384xf32> to vector<1x128xf32>
    %39 = vector.extract_strided_slice %34 {offsets = [4, 0], sizes = [1, 128], strides = [1, 1]} : vector<8x384xf32> to vector<1x128xf32>
    %40 = vector.extract_strided_slice %34 {offsets = [5, 0], sizes = [1, 128], strides = [1, 1]} : vector<8x384xf32> to vector<1x128xf32>
    %41 = vector.extract_strided_slice %34 {offsets = [6, 0], sizes = [1, 128], strides = [1, 1]} : vector<8x384xf32> to vector<1x128xf32>
    %42 = vector.extract_strided_slice %34 {offsets = [7, 0], sizes = [1, 128], strides = [1, 1]} : vector<8x384xf32> to vector<1x128xf32>
    %c0_10 = arith.constant 0 : index
    %c0_11 = arith.constant 0 : index
    %c0_12 = arith.constant 0 : index
    %43 = vector.load %arg2[%c0_10, %c0_11, %c0_12] : memref<1x1x8xf32, #tpu.memory_space<vmem>>, vector<1x1x8xf32>
    %44 = vector.shape_cast %43 : vector<1x1x8xf32> to vector<1x8xf32>
    %c0_13 = arith.constant 0 : index
    %c0_14 = arith.constant 0 : index
    %c0_15 = arith.constant 0 : index
    %45 = vector.load %arg3[%c0_13, %c0_14, %c0_15] : memref<1x8x1xf32, #tpu.memory_space<vmem>>, vector<1x8x1xf32>
    %46 = vector.shape_cast %45 : vector<1x8x1xf32> to vector<8x1xf32>
    %cst = arith.constant 1.000000e+00 : f32
    %47 = vector.broadcast %cst : f32 to vector<1x8xf32>
    %48 = arith.subf %44, %47 : vector<1x8xf32>
    %cst_16 = arith.constant 1.000000e+09 : f32
    %49 = vector.broadcast %cst_16 : f32 to vector<1x8xf32>
    %50 = arith.mulf %48, %49 : vector<1x8xf32>
    %c0_17 = arith.constant 0 : index
    %c0_18 = arith.constant 0 : index
    %51 = vector.load %arg5[%c0_17, %c0_18] : memref<128x384xbf16, #tpu.memory_space<vmem>>, vector<128x384xbf16>
    %cst_19 = arith.constant dense<0.000000e+00> : vector<8x384xf32>
    %52 = tpu.matmul %33, %51, %cst_19 {dimension_numbers = #tpu.dot_dimension_numbers<[1], [0], [0], [1], [0, 0, 1, 1], [], []>} : vector<8x128xbf16>, vector<128x384xbf16>, vector<8x384xf32> -> vector<8x384xf32>
    %53 = vector.broadcast %35 : vector<1x384xf32> to vector<8x384xf32>
    %54 = arith.addf %52, %53 : vector<8x384xf32>
    %55 = vector.extract_strided_slice %54 {offsets = [0, 0], sizes = [8, 128], strides = [1, 1]} : vector<8x384xf32> to vector<8x128xf32>
    %56 = vector.extract_strided_slice %54 {offsets = [0, 128], sizes = [8, 128], strides = [1, 1]} : vector<8x384xf32> to vector<8x128xf32>
    %57 = vector.extract_strided_slice %54 {offsets = [0, 256], sizes = [8, 128], strides = [1, 1]} : vector<8x384xf32> to vector<8x128xf32>
    %58 = arith.truncf %55 : vector<8x128xf32> to vector<8x128xbf16>
    %59 = arith.truncf %56 : vector<8x128xf32> to vector<8x128xbf16>
    "tpu.trace_start"() <{level = 10 : i32, message = "qd,kd->qk"}> : () -> ()
    %cst_20 = arith.constant dense<0.000000e+00> : vector<8x8xf32>
    %60 = tpu.matmul %58, %59, %cst_20 {dimension_numbers = #tpu.dot_dimension_numbers<[1], [1], [0], [0], [0, 0, 1, 0], [], []>} : vector<8x128xbf16>, vector<8x128xbf16>, vector<8x8xf32> -> vector<8x8xf32>
    "tpu.trace_stop"() : () -> ()
    %61 = vector.broadcast %50 : vector<1x8xf32> to vector<8x8xf32>
    %62 = arith.addf %60, %61 : vector<8x8xf32>
    %cst_21 = arith.constant dense<0xFF800000> : vector<8xf32>
    %63 = vector.multi_reduction <maximumf>, %62, %cst_21 [1] : vector<8x8xf32> to vector<8xf32>
    %64 = vector.shape_cast %63 : vector<8xf32> to vector<8x1xf32>
    %65 = vector.broadcast %64 : vector<8x1xf32> to vector<8x8xf32>
    %66 = arith.subf %62, %65 : vector<8x8xf32>
    %67 = math.exp %66 : vector<8x8xf32>
    %cst_22 = arith.constant dense<0.000000e+00> : vector<8xf32>
    %68 = vector.multi_reduction <add>, %67, %cst_22 [1] : vector<8x8xf32> to vector<8xf32>
    %69 = vector.shape_cast %68 : vector<8xf32> to vector<8x1xf32>
    %70 = tpu.reciprocal %69 {approx = true} : vector<8x1xf32> -> vector<8x1xf32>
    %71 = vector.broadcast %70 : vector<8x1xf32> to vector<8x8xf32>
    %72 = arith.mulf %67, %71 : vector<8x8xf32>
    %73 = arith.truncf %72 : vector<8x8xf32> to vector<8x8xbf16>
    %74 = arith.truncf %57 : vector<8x128xf32> to vector<8x128xbf16>
    %cst_23 = arith.constant dense<0.000000e+00> : vector<8x128xf32>
    %75 = tpu.matmul %73, %74, %cst_23 {dimension_numbers = #tpu.dot_dimension_numbers<[1], [0], [0], [1], [0, 0, 1, 1], [], []>} : vector<8x8xbf16>, vector<8x128xbf16>, vector<8x128xf32> -> vector<8x128xf32>
    %76 = arith.truncf %75 : vector<8x128xf32> to vector<8x128xbf16>
    %c0_24 = arith.constant 0 : index
    %c0_25 = arith.constant 0 : index
    %77 = vector.load %arg6[%c0_24, %c0_25] : memref<128x128xbf16, #tpu.memory_space<vmem>>, vector<128x128xbf16>
    %cst_26 = arith.constant dense<0.000000e+00> : vector<8x128xf32>
    %78 = tpu.matmul %76, %77, %cst_26 {dimension_numbers = #tpu.dot_dimension_numbers<[1], [0], [0], [1], [0, 0, 1, 1], [], []>} : vector<8x128xbf16>, vector<128x128xbf16>, vector<8x128xf32> -> vector<8x128xf32>
    %79 = vector.broadcast %36 : vector<1x128xf32> to vector<8x128xf32>
    %80 = arith.addf %78, %79 : vector<8x128xf32>
    %81 = arith.addf %32, %80 : vector<8x128xf32>
    %cst_27 = arith.constant dense<0.000000e+00> : vector<8xf32>
    %82 = vector.multi_reduction <add>, %81, %cst_27 [1] : vector<8x128xf32> to vector<8xf32>
    %83 = vector.shape_cast %82 : vector<8xf32> to vector<8x1xf32>
    %cst_28 = arith.constant 1.280000e+02 : f32
    %84 = vector.broadcast %cst_28 : f32 to vector<8x1xf32>
    %85 = arith.divf %83, %84 : vector<8x1xf32>
    %86 = vector.broadcast %85 : vector<8x1xf32> to vector<8x128xf32>
    %87 = arith.subf %81, %86 : vector<8x128xf32>
    %88 = arith.mulf %87, %87 : vector<8x128xf32>
    %cst_29 = arith.constant dense<0.000000e+00> : vector<8xf32>
    %89 = vector.multi_reduction <add>, %88, %cst_29 [1] : vector<8x128xf32> to vector<8xf32>
    %90 = vector.shape_cast %89 : vector<8xf32> to vector<8x1xf32>
    %cst_30 = arith.constant 1.280000e+02 : f32
    %91 = vector.broadcast %cst_30 : f32 to vector<8x1xf32>
    %92 = arith.divf %90, %91 : vector<8x1xf32>
    %93 = vector.broadcast %85 : vector<8x1xf32> to vector<8x128xf32>
    %94 = arith.subf %81, %93 : vector<8x128xf32>
    %cst_31 = arith.constant 9.99999974E-6 : f32
    %95 = vector.broadcast %cst_31 : f32 to vector<8x1xf32>
    %96 = arith.addf %92, %95 : vector<8x1xf32>
    %97 = math.rsqrt %96 : vector<8x1xf32>
    %98 = vector.broadcast %97 : vector<8x1xf32> to vector<8x128xf32>
    %99 = arith.mulf %94, %98 : vector<8x128xf32>
    %100 = vector.broadcast %39 : vector<1x128xf32> to vector<8x128xf32>
    %101 = arith.mulf %99, %100 : vector<8x128xf32>
    %102 = vector.broadcast %40 : vector<1x128xf32> to vector<8x128xf32>
    %103 = arith.addf %101, %102 : vector<8x128xf32>
    %104 = arith.truncf %103 : vector<8x128xf32> to vector<8x128xbf16>
    %c0_32 = arith.constant 0 : index
    %c0_33 = arith.constant 0 : index
    %105 = vector.load %arg7[%c0_32, %c0_33] : memref<128x256xbf16, #tpu.memory_space<vmem>>, vector<128x256xbf16>
    %cst_34 = arith.constant dense<0.000000e+00> : vector<8x256xf32>
    %106 = tpu.matmul %104, %105, %cst_34 {dimension_numbers = #tpu.dot_dimension_numbers<[1], [0], [0], [1], [0, 0, 1, 1], [], []>} : vector<8x128xbf16>, vector<128x256xbf16>, vector<8x256xf32> -> vector<8x256xf32>
    %107 = vector.broadcast %37 : vector<1x256xf32> to vector<8x256xf32>
    %108 = arith.addf %106, %107 : vector<8x256xf32>
    %109 = arith.mulf %108, %108 : vector<8x256xf32>
    %110 = arith.mulf %108, %109 : vector<8x256xf32>
    %cst_35 = arith.constant 4.471500e-02 : f32
    %111 = vector.broadcast %cst_35 : f32 to vector<8x256xf32>
    %112 = arith.mulf %111, %110 : vector<8x256xf32>
    %113 = arith.addf %108, %112 : vector<8x256xf32>
    %cst_36 = arith.constant 0.797884583 : f32
    %114 = vector.broadcast %cst_36 : f32 to vector<8x256xf32>
    %115 = arith.mulf %114, %113 : vector<8x256xf32>
    %116 = math.tanh %115 : vector<8x256xf32>
    %cst_37 = arith.constant 1.000000e+00 : f32
    %117 = vector.broadcast %cst_37 : f32 to vector<8x256xf32>
    %118 = arith.addf %117, %116 : vector<8x256xf32>
    %cst_38 = arith.constant 5.000000e-01 : f32
    %119 = vector.broadcast %cst_38 : f32 to vector<8x256xf32>
    %120 = arith.mulf %119, %118 : vector<8x256xf32>
    %121 = arith.mulf %108, %120 : vector<8x256xf32>
    %122 = arith.truncf %121 : vector<8x256xf32> to vector<8x256xbf16>
    %c0_39 = arith.constant 0 : index
    %c0_40 = arith.constant 0 : index
    %123 = vector.load %arg8[%c0_39, %c0_40] : memref<256x128xbf16, #tpu.memory_space<vmem>>, vector<256x128xbf16>
    %cst_41 = arith.constant dense<0.000000e+00> : vector<8x128xf32>
    %124 = tpu.matmul %122, %123, %cst_41 {dimension_numbers = #tpu.dot_dimension_numbers<[1], [0], [0], [1], [0, 0, 1, 1], [], []>} : vector<8x256xbf16>, vector<256x128xbf16>, vector<8x128xf32> -> vector<8x128xf32>
    %125 = vector.broadcast %38 : vector<1x128xf32> to vector<8x128xf32>
    %126 = arith.addf %124, %125 : vector<8x128xf32>
    %127 = arith.addf %103, %126 : vector<8x128xf32>
    %cst_42 = arith.constant dense<0.000000e+00> : vector<8xf32>
    %128 = vector.multi_reduction <add>, %127, %cst_42 [1] : vector<8x128xf32> to vector<8xf32>
    %129 = vector.shape_cast %128 : vector<8xf32> to vector<8x1xf32>
    %cst_43 = arith.constant 1.280000e+02 : f32
    %130 = vector.broadcast %cst_43 : f32 to vector<8x1xf32>
    %131 = arith.divf %129, %130 : vector<8x1xf32>
    %132 = vector.broadcast %131 : vector<8x1xf32> to vector<8x128xf32>
    %133 = arith.subf %127, %132 : vector<8x128xf32>
    %134 = arith.mulf %133, %133 : vector<8x128xf32>
    %cst_44 = arith.constant dense<0.000000e+00> : vector<8xf32>
    %135 = vector.multi_reduction <add>, %134, %cst_44 [1] : vector<8x128xf32> to vector<8xf32>
    %136 = vector.shape_cast %135 : vector<8xf32> to vector<8x1xf32>
    %cst_45 = arith.constant 1.280000e+02 : f32
    %137 = vector.broadcast %cst_45 : f32 to vector<8x1xf32>
    %138 = arith.divf %136, %137 : vector<8x1xf32>
    %139 = vector.broadcast %131 : vector<8x1xf32> to vector<8x128xf32>
    %140 = arith.subf %127, %139 : vector<8x128xf32>
    %cst_46 = arith.constant 9.99999974E-6 : f32
    %141 = vector.broadcast %cst_46 : f32 to vector<8x1xf32>
    %142 = arith.addf %138, %141 : vector<8x1xf32>
    %143 = math.rsqrt %142 : vector<8x1xf32>
    %144 = vector.broadcast %143 : vector<8x1xf32> to vector<8x128xf32>
    %145 = arith.mulf %140, %144 : vector<8x128xf32>
    %146 = vector.broadcast %41 : vector<1x128xf32> to vector<8x128xf32>
    %147 = arith.mulf %145, %146 : vector<8x128xf32>
    %148 = vector.broadcast %42 : vector<1x128xf32> to vector<8x128xf32>
    %149 = arith.addf %147, %148 : vector<8x128xf32>
    %150 = vector.broadcast %46 : vector<8x1xf32> to vector<8x128xf32>
    %151 = arith.mulf %149, %150 : vector<8x128xf32>
    %cst_47 = arith.constant dense<0.000000e+00> : vector<128xf32>
    %152 = vector.multi_reduction <add>, %151, %cst_47 [0] : vector<8x128xf32> to vector<128xf32>
    %153 = vector.shape_cast %152 : vector<128xf32> to vector<1x128xf32>
    %cst_48 = arith.constant dense<0.000000e+00> : vector<1xf32>
    %154 = vector.multi_reduction <add>, %46, %cst_48 [0] : vector<8x1xf32> to vector<1xf32>
    %155 = vector.shape_cast %154 : vector<1xf32> to vector<1x1xf32>
    %cst_49 = arith.constant 9.99999971E-10 : f32
    %156 = vector.broadcast %cst_49 : f32 to vector<1x1xf32>
    %157 = arith.maximumf %155, %156 : vector<1x1xf32>
    %158 = vector.broadcast %157 : vector<1x1xf32> to vector<1x128xf32>
    %159 = arith.divf %153, %158 : vector<1x128xf32>
    %160 = vector.shape_cast %159 : vector<1x128xf32> to vector<1x1x128xf32>
    %c0_50 = arith.constant 0 : index
    %c0_51 = arith.constant 0 : index
    %c0_52 = arith.constant 0 : index
    %161 = vector.load %arg10[%c0_50, %c0_51, %c0_52] : memref<1x1x128xf32, #tpu.memory_space<vmem>>, vector<1x1x128xf32>
    tpu.vector_store %arg10[%c0_50, %c0_51, %c0_52], %160 {strides = array<i32>} : memref<1x1x128xf32, #tpu.memory_space<vmem>>, vector<1x1x128xf32>,
    return
  }
  func.func @transform_0(%arg0: i32, %arg1: memref<2x8xi32, #tpu.memory_space<smem>>) -> (i32, i32, i32) {
    %c0_i32 = arith.constant 0 : i32
    %c0_i32_0 = arith.constant 0 : i32
    %c0_i32_1 = arith.constant 0 : i32
    return %arg0, %c0_i32, %c0_i32_0 : i32, i32, i32
  }
  func.func @transform_1(%arg0: i32, %arg1: memref<2x8xi32, #tpu.memory_space<smem>>) -> (i32, i32, i32) {
    %c0_i32 = arith.constant 0 : i32
    %c0_i32_0 = arith.constant 0 : i32
    %c0_i32_1 = arith.constant 0 : i32
    return %arg0, %c0_i32, %c0_i32_0 : i32, i32, i32
  }
  func.func @transform_2(%arg0: i32, %arg1: memref<2x8xi32, #tpu.memory_space<smem>>) -> (i32, i32) {
    %c0_i32 = arith.constant 0 : i32
    %c0_i32_0 = arith.constant 0 : i32
    %c0_i32_1 = arith.constant 0 : i32
    return %c0_i32, %c0_i32_0 : i32, i32
  }
  func.func @transform_3(%arg0: i32, %arg1: memref<2x8xi32, #tpu.memory_space<smem>>) -> (i32, i32) {
    %c0_i32 = arith.constant 0 : i32
    %c0_i32_0 = arith.constant 0 : i32
    %c0_i32_1 = arith.constant 0 : i32
    return %c0_i32, %c0_i32_0 : i32, i32
  }
  func.func @transform_4(%arg0: i32, %arg1: memref<2x8xi32, #tpu.memory_space<smem>>) -> (i32, i32) {
    %c0_i32 = arith.constant 0 : i32
    %c0_i32_0 = arith.constant 0 : i32
    %c0_i32_1 = arith.constant 0 : i32
    return %c0_i32, %c0_i32_0 : i32, i32
  }
  func.func @transform_5(%arg0: i32, %arg1: memref<2x8xi32, #tpu.memory_space<smem>>) -> (i32, i32) {
    %c0_i32 = arith.constant 0 : i32
    %c0_i32_0 = arith.constant 0 : i32
    %c0_i32_1 = arith.constant 0 : i32
    return %c0_i32, %c0_i32_0 : i32, i32
  }
  func.func @transform_6(%arg0: i32, %arg1: memref<2x8xi32, #tpu.memory_space<smem>>) -> (i32, i32) {
    %c0_i32 = arith.constant 0 : i32
    %c0_i32_0 = arith.constant 0 : i32
    %c0_i32_1 = arith.constant 0 : i32
    return %c0_i32, %c0_i32_0 : i32, i32
  }
  func.func @transform_7(%arg0: i32, %arg1: memref<2x8xi32, #tpu.memory_space<smem>>) -> (i32, i32) {
    %c0_i32 = arith.constant 0 : i32
    %c0_i32_0 = arith.constant 0 : i32
    %c0_i32_1 = arith.constant 0 : i32
    return %c0_i32, %c0_i32_0 : i32, i32
  }
  func.func @transform_8(%arg0: i32, %arg1: memref<2x8xi32, #tpu.memory_space<smem>>) -> (i32, i32, i32) {
    %c0_i32 = arith.constant 0 : i32
    %c0_i32_0 = arith.constant 0 : i32
    %c0_i32_1 = arith.constant 0 : i32
    return %arg0, %c0_i32, %c0_i32_0 : i32, i32, i32
  }
}

</mosaic_0001>

<bundles_post_ra>
// kernel: style_encoder_forward.1
= control target key start
LH: loop header
LB: loop body
LE: loop exit
PB: predicated region body
PF: predicated region fallthrough
CT: control target
= control target key end

     0   :  { %s2420_s0 = inlined_call_operand.vmem [shape: s32[2,8], index: 0, kind: input, shape index: {}]   ;;  %s2421_s1 = inlined_call_operand.vmem [shape: f32[2,1,8], index: 1, kind: input, shape index: {}]   ;;  %s2422_s2 = inlined_call_operand.vmem [shape: f32[2,8,1], index: 2, kind: input, shape index: {}]   ;;  %s2423_s3 = inlined_call_operand.hbm [shape: f32[64,128], index: 3, kind: input, shape index: {}]   ;;  %s2424_s4 = inlined_call_operand.hbm [shape: bf16[128,384], index: 4, kind: input, shape index: {}]   ;;  %s2425_s5 = inlined_call_operand.hbm [shape: bf16[128,128], index: 5, kind: input, shape index: {}]   ;;  %s2426_s6 = inlined_call_operand.hbm [shape: bf16[128,256], index: 6, kind: input, shape index: {}]   ;;  %s2427_s7 = inlined_call_operand.hbm [shape: bf16[256,128], index: 7, kind: input, shape index: {}]   ;;  %s2428_s8 = inlined_call_operand.vmem [shape: f32[8,384], index: 8, kind: input, shape index: {}]   ;;  %s2429_s9 = inlined_call_operand.hbm [shape: f32[2,1,128], index: 9, kind: output, shape index: {}]  }
   0x1   :  { %s14_s11 = sshll.u32 %s2420_s0, 4  ;;  %s15_s11 = int_to_ptr.vmem [resolvable:$true] %s14_s11 }
   0x2   :  { %s1864_s12 = scalar_lea.vmem %s15_s11, 32  ;;  %p1869_p1 = scmp.lt.s32.totalorder %s15_s11, %s15_s11 }
   0x3   :  { %p1865_p0 = scmp.ne.s32.totalorder %s15_s11, %s1864_s12  ;;  %p1870_p2 = scmp.lt.s32.totalorder %s1864_s12, %s1864_s12 }
   0x5   :  { %p1871_p3 = por %p1870_p2, %p1869_p1 }
   0x7   :  { %p1872_p4 = pnand %p1871_p3, %p1865_p0 }
   0x9   :  { %1875 = shalt.err (!%p1872_p4)  }
   0xa   :  { %s2082_s13 = smov [#allocation3]  }
   0xb   :  { %17 = dma.vmem_to_smem %s15_s11, 32, %s2082_s13, [#allocation2] }
   0xc   :  { %2048 = dma.done.wait [#allocation2], 32 }
   0xd   :  { %2049 = vsyncadd [#allocation2], 4294967264 }
   0xe   :  { %19 = sfence }
   0xf   :  { %20 = vsyncpa [#allocation5], 0 }
  0x10   :  { %21 = vsyncpa [#allocation8], 0 }
  0x11   :  { %22 = vsyncpa [#allocation11], 0 }
  0x12   :  { %23 = vsyncpa [#allocation6], 0 }
  0x13   :  { %25 = vsyncpa [#allocation6 + $0x1], 0  ;;  %s2151_s14 = smov 0   ;;  %s2153_s0 = smov 0  }
  0x14   :  { %s2155_s15 = smov 0   ;;  %s2157_s16 = smov 0  }
  0x15 LB: > { %s2172_s17 = sadd.s32 4294967295, %s2080_s16   ;;  %s1487_s18 = sadd.s32 4294967294, %s2080_s16   ;;  %s2080_s16 = sphi %s2157_s16, %s2448_s16   ;;  %s2076_s15 = sphi %s2155_s15, %s2447_s15   ;;  %s2072_s0 = sphi %s2153_s0, %s2446_s0   ;;  %s2068_s14 = sphi %s2151_s14, %s2445_s14  }
  0x16   : > { %s2176_s19 = sadd.s32 1, %s2080_s16   ;;  %s216_s20 = sadd.s32 1, %s2076_s15 }
  0x17   : > { %s213_s21 = ssub.s32 %s2080_s16, %s2176_s19  ;;  %p226_p5 = scmp.ne.s32.totalorder %s2076_s15, %s2072_s0 }
  0x18   : > { %p214_p6 = scmp.eq.s32.totalorder %s213_s21, 0  ;;  %p227_p7 = scmp.eq.s32.totalorder %s2172_s17, 1 }
  0x19   : > { %p232_p8 = scmp.ne.s32.totalorder %s2072_s0, %s2068_s14  ;;  %p233_p9 = scmp.eq.s32.totalorder %s1487_s18, 1 }
  0x1a   : > { %s2187_s22 = scalar_select %p214_p6, %s2076_s15, %s216_s20  }
  0x1b   : > { %p2189_p10 = por %p227_p7, %p226_p5  ;;  %p2193_p11 = por %p233_p9, %p232_p8 }
  0x1c   : > { %2431 = sst [smem:[#allocation19_spill]] %s2187_s22  ;;  %p1488_p12 = scmp.ge.s32.totalorder %s2080_s16, 1 }
  0x1d   : > { %s2433_s24 = scalar_select %p2193_p11, 1, 0 }
  0x1e   : > { %p240_p13 = scmp.lt.s32.totalorder %s2080_s16, 3  ;;  %p2430_p0 = scmp.eq.s32.totalorder %s2172_s17, 0 }
  0x1f   : > { %s2083_s26 = smov [#allocation7]   ;;  %s2084_s29 = smov [#allocation10]  }
  0x20   : > { %p2200_p1 = pnand %p1488_p12, %p240_p13  ;;  %s265_s27 = sshll.u32 %s2083_s26, 4  ;;  %s266_s27 = int_to_ptr.vmem [resolvable:$true] %s265_s27 }
  0x21   : > { %s291_s30 = sshll.u32 %s2084_s29, 4  ;;  %s1887_s11 = scalar_lea.vmem %s266_s27, 3072  ;;  %s292_s30 = int_to_ptr.vmem [resolvable:$true] %s291_s30 }
  0x22   : > { %p1690_p2 = pneg %p2200_p1  ;;  %p1888_p5 = scmp.ne.s32.totalorder %s266_s27, %s1887_s11 }
  0x23   : > { %p1895_p8 = scmp.lt.s32.totalorder %s266_s27, %s266_s27  ;;  %p1896_p9 = scmp.lt.s32.totalorder %s1887_s11, %s1887_s11 }
  0x24   : > { %p2208_p3 = pnand %p2430_p0, %p1690_p2 }
  0x25   : > { %p1897_p12 = por %p1896_p9, %p1895_p8 }
  0x26   : > { %p2214_p4 = pneg %p2208_p3 }
  0x28   : > { %p1890_p6 = pnand %p1888_p5, %p2214_p4 }
  0x2a   : > { %p1891_p7 = pneg %p1890_p6 }
  0x2c   : > { %p1898_p13 = pnand %p1897_p12, %p1891_p7 }
  0x2e   : > { %1901 = shalt.err (!%p1898_p13)
}
  0x2f   : > { %s2085_s12 = smov 192   ;;  %s2086_s13 = smov 12  }
  0x30   : > { %1696 = dma.hbm_to_vmem [thread:$0]  (!%p2208_p3), %s2424_s4, 3072, %s266_s27, [#allocation8], %s2085_s12, %s2085_s12, %s2086_s13  }
  0x31   : > { %s2087_s21 = smov [#allocation4]   ;;  %s1913_s29 = scalar_lea.vmem %s292_s30, 2048 }
  0x32   : > { %s252_s26 = sshll.u32 %s2087_s21, 4  ;;  %p1914_p2 = scmp.ne.s32.totalorder %s292_s30, %s1913_s29  ;;  %s253_s26 = int_to_ptr.vmem [resolvable:$true] %s252_s26 }
  0x33   : > { %p1921_p8 = scmp.lt.s32.totalorder %s292_s30, %s292_s30  ;;  %p1922_p7 = scmp.lt.s32.totalorder %s1913_s29, %s1913_s29 }
  0x34   : > { %p1916_p5 = pnand %p1914_p2, %p2214_p4 }
  0x35   : > { %p1923_p9 = por %p1922_p7, %p1921_p8 }
  0x36   : > { %p1917_p6 = pneg %p1916_p5 }
  0x38   : > { %p1924_p12 = pnand %p1923_p9, %p1917_p6 }
  0x3a   : > { %1927 = shalt.err (!%p1924_p12)
}
  0x3b   : > { %s2088_s11 = smov 128   ;;  %s2089_s22 = smov 8  }
  0x3c   : > { %1702 = dma.hbm_to_vmem [thread:$0]  (!%p2208_p3), %s2426_s6, 2048, %s292_s30, [#allocation11], %s2088_s11, %s2088_s11, %s2089_s22  }
  0x3d   : > { %s1939_s12 = scalar_lea.vmem %s253_s26, 1024  ;;  %p1947_p0 = scmp.lt.s32.totalorder %s253_s26, %s253_s26 }
  0x3e   : > { %p1940_p13 = scmp.ne.s32.totalorder %s253_s26, %s1939_s12  ;;  %p1948_p11 = scmp.lt.s32.totalorder %s1939_s12, %s1939_s12 }
  0x40   : > { %p1942_p2 = pnand %p1940_p13, %p2214_p4  ;;  %p1949_p8 = por %p1948_p11, %p1947_p0 }
  0x42   : > { %p1943_p5 = pneg %p1942_p2 }
  0x44   : > { %p1950_p6 = pnand %p1949_p8, %p1943_p5 }
  0x46   : > { %1953 = shalt.err (!%p1950_p6)
}
  0x47   : > { %1693 = dma.hbm_to_vmem [thread:$0]  (!%p2208_p3), %s2423_s3, 1024, %s253_s26, [#allocation5], %s2088_s11, %s2088_s11, %s2089_s22  }
  0x48   : > { %s2090_s21 = smov [#allocation9]  }
  0x49   : > { %s278_s30 = sshll.u32 %s2090_s21, 4  ;;  %s279_s30 = int_to_ptr.vmem [resolvable:$true] %s278_s30 }
  0x4a   : > { %s1965_s29 = scalar_lea.vmem %s279_s30, 1024  ;;  %p1973_p13 = scmp.lt.s32.totalorder %s279_s30, %s279_s30 }
  0x4b   : > { %p1966_p7 = scmp.ne.s32.totalorder %s279_s30, %s1965_s29  ;;  %p1974_p2 = scmp.lt.s32.totalorder %s1965_s29, %s1965_s29 }
  0x4d   : > { %p1968_p9 = pnand %p1966_p7, %p2214_p4  ;;  %p1975_p11 = por %p1974_p2, %p1973_p13 }
  0x4f   : > { %p1969_p12 = pneg %p1968_p9 }
  0x51   : > { %p1976_p0 = pnand %p1975_p11, %p1969_p12 }
  0x53   : > { %1979 = shalt.err (!%p1976_p0)
}
  0x54   : > { %s2091_s18 = smov 64   ;;  %s2092_s27 = smov 4  }
  0x55   : > { %1699 = dma.hbm_to_vmem [thread:$0]  (!%p2208_p3), %s2425_s5, 1024, %s279_s30, [#allocation8], %s2091_s18, %s2091_s18, %s2092_s27  }
  0x56   : > { %s2093_s26 = smov [#allocation12]  }
  0x57   : > { %s304_s11 = sshll.u32 %s2093_s26, 4  ;;  %s305_s11 = int_to_ptr.vmem [resolvable:$true] %s304_s11 }
  0x58   : > { %s1991_s13 = scalar_lea.vmem %s305_s11, 2048  ;;  %p1999_p7 = scmp.lt.s32.totalorder %s305_s11, %s305_s11 }
  0x59   : > { %p1992_p5 = scmp.ne.s32.totalorder %s305_s11, %s1991_s13  ;;  %p2000_p9 = scmp.lt.s32.totalorder %s1991_s13, %s1991_s13 }
  0x5b   : > { %p1994_p8 = pnand %p1992_p5, %p2214_p4  ;;  %p2001_p12 = por %p2000_p9, %p1999_p7 }
  0x5d   : > { %p1995_p6 = pneg %p1994_p8 }
  0x5f   : > { %p2002_p13 = pnand %p2001_p12, %p1995_p6 }
  0x61   : > { %2005 = shalt.err (!%p2002_p13)
}
  0x62   : > { %1705 = dma.hbm_to_vmem [thread:$0]  (!%p2208_p3), %s2427_s7, 2048, %s305_s11, [#allocation11], %s2091_s18, %s2091_s18, %s2092_s27  }
  0x63   : > { %336 = sbr.rel (%p2200_p1) target bundleno = 2328 (0x918), region = 52  ;;  %p2437_p2 = scmp.eq.s32.totalorder (!%p2200_p1), %s2172_s17, 0 }
  0x68   : > { %2051 = dma.done.wait (%p2437_p2), [#allocation5], 1024   ;;  %p2438_p4 = pmov %p2437_p2 }
  0x69   : > { %p2439_p11 = pmov %p2437_p2 }
  0x6a   : > { %2053 = vsyncadd (%p2438_p4), [#allocation5], 4294966272 }
  0x6b   : > { %2055 = dma.done.wait (%p2439_p11), [#allocation8], 4096   ;;  %p2440_p0 = pmov %p2437_p2 }
  0x6d   : > { %2057 = vsyncadd (%p2440_p0), [#allocation8], 4294963200  ;;  %p2441_p5 = pmov %p2440_p0 }
  0x6e   : > { %p2442_p3 = pmov %p2440_p0 }
  0x6f   : > { %2059 = dma.done.wait (%p2441_p5), [#allocation11], 4096  }
  0x70   : > { %2061 = vsyncadd (%p2442_p3), [#allocation11], 4294963200  ;;  %s2268_s25 = sshll.u32 %s2172_s17, 7  ;;  %v2094_v0 = vmov 0   ;;  %v2095_v1 = vmov 0.0   ;;  %vm448_vm0 = vcmask 1040384   ;;  %v502_v49 = vlaneseq }
  0x71   : > { %674 = vmatprep.mubr.bf16.mxu0 %v2094_v0  ;;  %1769 = vset.pattern.permute.xlu1 %v2094_v0  ;;  %s399_s28 = sadd.s32 1, %s2268_s25  ;;  %s403_s10 = sadd.s32 2, %s2268_s25  ;;  %v1770_v2 = vld [vmem:[#allocation7 + $0xac] ss:$12 sps:$4 sm:$0xff]   ;;  %v1772_v3 = vld [vmem:[#allocation7 + $0xa8] ss:$12 sps:$4 sm:$0xff]  }
  0x72   : > { %1768 = vset.pattern.permute.xlu0 %v2094_v0  ;;  %1616 = vmatprep.subr.bf16.mxu1 %v2095_v1  ;;  %s2277_s30 = sld [smem:[#allocation3 + %s2268_s25]]  ;;  %s407_s29 = sadd.s32 3, %s2268_s25  ;;  %v1773_v4 = vld [vmem:[#allocation7 + $0x94] ss:$12 sps:$4 sm:$0xff]   ;;  %v1775_v5 = vld [vmem:[#allocation7 + $0x90] ss:$12 sps:$4 sm:$0xff]  }
  0x73   : > { %s400_s18 = sld [smem:[#allocation3 + %s399_s28]]  ;;  %s411_s27 = sadd.s32 4, %s2268_s25  ;;  %642 = vmatprep.subr.bf16.mxu0 %v1770_v2  ;;  %v1776_v6 = vld [vmem:[#allocation7 + $0x7c] ss:$12 sps:$4 sm:$0xff]   ;;  %v1778_v7 = vld [vmem:[#allocation7 + $0x78] ss:$12 sps:$4 sm:$0xff]  }
  0x74   : > { %s404_s12 = sld [smem:[#allocation3 + %s403_s10]]  ;;  %s415_s22 = sadd.s32 5, %s2268_s25  ;;  %643 = vmatpush1.bf16.msra.mxu0 %v1772_v3  ;;  %v1779_v8 = vld [vmem:[#allocation7 + $0x64] ss:$12 sps:$4 sm:$0xff]   ;;  %v1781_v9 = vld [vmem:[#allocation7 + $0x60] ss:$12 sps:$4 sm:$0xff]  }
  0x75   : > { %s408_s26 = sld [smem:[#allocation3 + %s407_s29]]  ;;  %s419_s13 = sadd.s32 6, %s2268_s25  ;;  %644 = vmatprep.subr.bf16.mxu0 %v1773_v4  ;;  %v1782_v10 = vld [vmem:[#allocation7 + $0x4c] ss:$12 sps:$4 sm:$0xff]   ;;  %vm450_vm1 = vcmask 1041408   ;;  %vm452_vm2 = vcmask 1042432  }
  0x76   : > { %s2282_s11 = sld [smem:[#allocation3 + %s411_s27]]  ;;  %s423_s28 = sadd.s32 7, %s2268_s25  ;;  %v1784_v16 = vld [vmem:[#allocation7 + $0x48] ss:$12 sps:$4 sm:$0xff]   ;;  %vm454_vm3 = vcmask 1043456   ;;  %vm456_vm4 = vcmask 1044480  }
  0x77   : > { %s2285_s20 = sld [smem:[#allocation3 + %s415_s22]]  ;;  %v1785_v21 = vld [vmem:[#allocation7 + $0x34] ss:$12 sps:$4 sm:$0xff]   ;;  %v1794_v25 = vld [vmem:[#allocation7 + $0xb0] ss:$12 sps:$4 sm:$0xff]   ;;  %vm458_vm5 = vcmask 1045504  }
  0x78   : > { %s2287_s21 = sld [smem:[#allocation3 + %s419_s13]]  ;;  %645 = vmatpush1.bf16.msra.mxu0 %v1775_v5  ;;  %s397_s25 = scalar_lea.vmem [#allocation4], %s2277_s30  ;;  %v1787_v28 = vld [vmem:[#allocation7 + $0x30] ss:$12 sps:$4 sm:$0xff]   ;;  %1617 = vmatpush3.bf16.msra.mxu1 %v1794_v25  ;;  %v1795_v30 = vld [vmem:[#allocation7 + $0x98] ss:$12 sps:$4 sm:$0xff]  }
  0x79   : > { %646 = vmatprep.subr.bf16.mxu0 %v1776_v6  ;;  %s2290_s10 = sld [smem:[#allocation3 + %s423_s28]]  ;;  %s401_s29 = scalar_lea.vmem [#allocation4], %s400_s18  ;;  %v398_v14 = vld [vmem:[%s397_s25] sm:$0x1]  ;;  %v1788_v31 = vld [vmem:[#allocation7 + $0x1c] ss:$12 sps:$4 sm:$0xff]   ;;  %1618 = vmatprep.subr.bf16.mxu1 %v2095_v1 }
  0x7a   : > { %v402_v11 = vld [vmem:[%s401_s29] sm:$0x1]  ;;  %s405_s27 = scalar_lea.vmem [#allocation4], %s404_s12  ;;  %v1790_v35 = vld [vmem:[#allocation7 + $0x18] ss:$12 sps:$4 sm:$0xff]   ;;  %vm460_vm6 = vcmask 1046528  }
  0x7b   : > { %v406_v12 = vld [vmem:[%s405_s27] sm:$0x1]  ;;  %s409_s22 = scalar_lea.vmem [#allocation4], %s408_s26  ;;  %v428_v18 = vrot.slane %v402_v11, 7  ;;  %v1791_v38 = vld [vmem:[#allocation7 + $0x4] ss:$12 sps:$4 sm:$0xff]  }
  0x7c   : > { %647 = vmatpush1.bf16.msra.mxu0 %v1778_v7  ;;  %v410_v13 = vld [vmem:[%s409_s22] sm:$0x1]  ;;  %s413_s13 = scalar_lea.vmem [#allocation4], %s2282_s11  ;;  %v431_v19 = vrot.slane %v406_v12, 6  ;;  %1619 = vmatpush3.bf16.msra.mxu1 %v1795_v30  ;;  %v1797_v40 = vld [vmem:[#allocation7 + $0x68] ss:$12 sps:$4 sm:$0xff]  }
  0x7d   : > { %648 = vmatprep.subr.bf16.mxu0 %v1779_v8  ;;  %v414_v15 = vld [vmem:[%s413_s13] sm:$0x1]  ;;  %s417_s28 = scalar_lea.vmem [#allocation4], %s2285_s20  ;;  %v434_v20 = vrot.slane %v410_v13, 5  ;;  %v449_v24 = vsel %vm448_vm0, %v398_v14, %v428_v18  ;;  %1620 = vmatprep.subr.bf16.mxu1 %v2095_v1  ;;  %v1798_v44 = vld [vmem:[#allocation7 + $0x50] ss:$12 sps:$4 sm:$0xff]  }
  0x7e   : > { %v418_v17 = vld [vmem:[%s417_s28] sm:$0x1]  ;;  %v437_v22 = vrot.slane %v414_v15, 4  ;;  %s421_s18 = scalar_lea.vmem [#allocation4], %s2287_s21  ;;  %v451_v27 = vsel %vm450_vm1, %v449_v24, %v431_v19  ;;  %v1799_v46 = vld [vmem:[#allocation7 + $0x38] ss:$12 sps:$4 sm:$0xff]  }
  0x7f   : > { %v422_v23 = vld [vmem:[%s421_s18] sm:$0x1]  ;;  %v440_v26 = vrot.slane %v418_v17, 3  ;;  %v453_v29 = vsel %vm452_vm2, %v451_v27, %v434_v20  ;;  %s425_s30 = scalar_lea.vmem [#allocation4], %s2290_s10  ;;  %v1801_v48 = vld [vmem:[#allocation7 + $0x8] ss:$12 sps:$4 sm:$0xff]  }
  0x80   : > { %649 = vmatpush1.bf16.msra.mxu0 %v1781_v9  ;;  %v455_v32 = vsel %vm454_vm3, %v453_v29, %v437_v22  ;;  %v426_v33 = vld [vmem:[%s425_s30] sm:$0x1]  ;;  %v443_v34 = vrot.slane %v422_v23, 2  ;;  %vm2096_vm7 = vmmov 0   ;;  %v2320_v50 = vshrl.u32 %v502_v49, 7  ;;  %v2325_v51 = vld [vmem:[%s2428_s8 + $0x8] sm:$0xff] }
  0x81   : > { %650 = vmatprep.subr.bf16.mxu0 %v1782_v10  ;;  %v457_v36 = vsel %vm456_vm4, %v455_v32, %v440_v26  ;;  %v1796_v37 = vld [vmem:[#allocation7 + $0x80] ss:$12 sps:$4 sm:$0xff]   ;;  %v446_v39 = vrot.slane %v426_v33, 1  ;;  %1632 = vmatprep.mubr.msk.bf16.mxu1 %vm2096_vm7, %v2095_v1  ;;  %v465_v2 = vld [vmem:[%s2428_s8 + $0x10] sm:$0xff]  ;;  %p387_p1 = scmp.lt.s32.totalorder %s2172_s17, 1  ;;  %vm771_vm8 = vcmask 64512  }
  0x82   : > { %v459_v41 = vsel %vm458_vm5, %v457_v36, %v443_v34  ;;  %v1793_v42 = vld [vmem:[#allocation7] ss:$12 sps:$4 sm:$0xff]   ;;  %1621 = vmatpush3.bf16.msra.mxu1 %v1796_v37  ;;  %v504_v52 = vsub.s32 0, %v2320_v50  ;;  %v1802_v26 = vld [vmem:[#allocation9 + $0x38] sm:$0xff]   ;;  %v1803_v27 = vld [vmem:[#allocation9 + $0x30] sm:$0xff]   ;;  %vm1335_vm9 = vcmask 7168  }
  0x83   : > { %1622 = vmatprep.subr.bf16.mxu1 %v2095_v1  ;;  %v2304_v43 = vsel %vm460_vm6, %v459_v41, %v446_v39  ;;  %v1800_v47 = vld [vmem:[#allocation7 + $0x20] ss:$12 sps:$4 sm:$0xff]   ;;  %s2344_s29 = scalar_select %p387_p1, %s2172_s17, 1  ;;  %v1806_v30 = vld [vmem:[#allocation9 + $0x18] sm:$0xff]  }
  0x84   : > { %651 = vmatpush1.bf16.msra.mxu0 %v1784_v16  ;;  %v462_v45 = vpack.c.bf16 %v2304_v43, %v2304_v43  ;;  %v509_v53 = vrot.slane %v2325_v51, %v504_v52  ;;  %v2332_v55 = vld [vmem:[%s2428_s8] sm:$0xff]  ;;  %v513_v3 = vrot.slane %v465_v2, %v504_v52  ;;  %v1808_v32 = vld [vmem:[#allocation9 + $0x8] sm:$0xff]   ;;  %v1824_v2 = vld [vmem:[#allocation10 + $0x34] ss:$8 sps:$4 sm:$0xff]   ;;  %s385_s12 = sand.u32 1, %s2072_s0   ;;  %s1569_s26 = sshll.u32 %s2172_s17, 4 }
  0x85   : > { %652 = vmatprep.subr.bf16.mxu0 %v1785_v21  ;;  %v505_v58 = vrot.slane %v2332_v55, %v504_v52  ;;  %s389_s25 = scalar_lea.vmem %s2421_s1, %s2344_s29  ;;  %v1805_v29 = vld [vmem:[#allocation9 + $0x20] sm:$0xff]   ;;  %s1501_s13 = sshll.u32 %s2344_s29, 3 }
  0x86   : > { %1623 = vmatpush3.bf16.msra.mxu1 %v1797_v40  ;;  %v466_v11 = vld [vmem:[%s389_s25] sm:$0x1]  ;;  %s393_s30 = scalar_lea.vmem %s2422_s2, %s1501_s13  ;;  %s386_s11 = scalar_lea.vmem [#allocation13], %s385_s12 }
  0x87   : > { %1624 = vmatprep.subr.bf16.mxu1 %v2095_v1  ;;  %v1503_v12 = vadd.f32 -1.0, %v466_v11  ;;  %v1809_v37 = vld [vmem:[#allocation9] sm:$0xff]   ;;  %s1365_s20 = sshll.u32 %s386_s11, 4  ;;  %s1363_s29 = scalar_lea.hbm %s2429_s9, %s1569_s26  ;;  %s1366_s20 = int_to_ptr.vmem [resolvable:$true] %s1365_s20 }
  0x88   : > { %653 = vmatpush1.bf16.msra.mxu0 %v1787_v28  ;;  %v1804_v28 = vld [vmem:[#allocation9 + $0x28] sm:$0xff]   ;;  %s1353_s27 = scalar_lea.sflag [#allocation6], %s385_s12  ;;  %s2006_s22 = scalar_lea.vmem %s1366_s20, 16 }
  0x89   : > { %654 = vmatprep.subr.bf16.mxu0 %v1788_v31  ;;  %v469_v13 = vmul.f32 1e+09, %v1503_v12  ;;  %v1807_v31 = vld [vmem:[#allocation9 + $0x10] sm:$0xff]   ;;  %p2007_p8 = scmp.ne.s32.totalorder %s1366_s20, %s2006_s22  ;;  %s2097_s25 = smov [#allocation13]  }
  0x8a   : > { %1625 = vmatpush3.bf16.msra.mxu1 %v1798_v44  ;;  %v850_v44 = vsub.s32 1, %v2320_v50  ;;  %s2010_s13 = sshll.u32 %s2097_s25, 4  ;;  %s2011_s13 = int_to_ptr.vmem [resolvable:$false] %s2010_s13 }
  0x8b   : > { %1626 = vmatprep.subr.bf16.mxu1 %v2095_v1  ;;  %v729_v14 = vrot.slane %v469_v13, %v504_v52  ;;  %v1810_v52 = vld [vmem:[#allocation10 + $0x70] ss:$8 sps:$4 sm:$0xff]   ;;  %v955_v13 = vsub.s32 4, %v2320_v50  ;;  %p2008_p6 = pnand %p2007_p8, %p2189_p10  ;;  %s2012_s17 = scalar_lea.vmem %s2011_s13, 32 }
  0x8c   : > { %655 = vmatpush1.bf16.msra.mxu0 %v1790_v35  ;;  %p2013_p9 = scmp.lt.s32.totalorder %s1366_s20, %s2011_s13  ;;  %p2014_p12 = scmp.lt.s32.totalorder %s2012_s17, %s2006_s22 }
  0x8d   : > { %656 = vmatprep.subr.bf16.mxu0 %v1791_v38  ;;  %p2009_p7 = pneg %p2008_p6 }
  0x8e   : > { %1627 = vmatpush3.bf16.msra.mxu1 %v1799_v46  ;;  %p2015_p13 = por %p2014_p12, %p2013_p9 }
  0x8f   : > { %1628 = vmatprep.subr.bf16.mxu1 %v2095_v1 }
  0x90   : > { %657 = vmatpush1.bf16.msra.mxu0 %v1793_v42  ;;  %p2016_p2 = pnand %p2015_p13, %p2009_p7 }
  0x91   : > { %1648 = vmatprep.subr.bf16.mxu0 %v2095_v1 }
  0x92   : > { %1629 = vmatpush3.bf16.msra.mxu1 %v1800_v47 }
  0x93   : > { %675 = vmatmul.mubr.bf16.vlgmr.msra.gmra.mxu0 %v462_v45  ;;  %1630 = vmatprep.subr.bf16.mxu1 %v2095_v1 }
  0x94   : > { %1664 = vmatprep.mubr.msk.bf16.mxu0 %vm2096_vm7, %v2095_v1  ;;  %1649 = vmatpush3.bf16.msra.mxu0 %v1802_v26  ;;  %v1838_v26 = vld [vmem:[#allocation12 + $0x68] sm:$0xff]  }
  0x95   : > { %1650 = vmatprep.subr.bf16.mxu0 %v2095_v1 }
  0x96   : > { %1631 = vmatpush3.bf16.msra.mxu1 %v1801_v48 }
  0x97   : > { %1636 = vmatprep.subr.bf16.mxu1 %v2095_v1 }
  0x98   : > { %1651 = vmatpush3.bf16.msra.mxu0 %v1803_v27  ;;  %v1839_v27 = vld [vmem:[#allocation12 + $0x28] sm:$0xff]  }
  0x99   : > { %1633 = vmatmul.mubr.bf16.vlgmr.msra.gmra.mxu1 %v462_v45  ;;  %1652 = vmatprep.subr.bf16.mxu0 %v2095_v1 }
  0x9a   : > { %1638 = vmatprep.mubr.msk.bf16.mxu1 %vm2096_vm7, %v2095_v1 }
  0x9c   : > { %1653 = vmatpush3.bf16.msra.mxu0 %v1804_v28  ;;  %v1840_v28 = vld [vmem:[#allocation12 + $0x60] sm:$0xff]  }
  0x9d   : > { %1654 = vmatprep.subr.bf16.mxu0 %v2095_v1 }
  0xa0   : > { %1655 = vmatpush3.bf16.msra.mxu0 %v1805_v29  ;;  %v1841_v29 = vld [vmem:[#allocation12 + $0x20] sm:$0xff]  }
  0xa1   : > { %1656 = vmatprep.subr.bf16.mxu0 %v2095_v1 }
  0xa4   : > { %1657 = vmatpush3.bf16.msra.mxu0 %v1806_v30  ;;  %v1842_v30 = vld [vmem:[#allocation12 + $0x58] sm:$0xff]  }
  0xa5   : > { %1658 = vmatprep.subr.bf16.mxu0 %v2095_v1 }
  0xa8   : > { %1659 = vmatpush3.bf16.msra.mxu0 %v1807_v31  ;;  %v1843_v31 = vld [vmem:[#allocation12 + $0x18] sm:$0xff]  }
  0xa9   : > { %1660 = vmatprep.subr.bf16.mxu0 %v2095_v1 }
  0xac   : > { %1661 = vmatpush3.bf16.msra.mxu0 %v1808_v32  ;;  %v1844_v32 = vld [vmem:[#allocation12 + $0x50] sm:$0xff]  }
  0xad   : > { %1662 = vmatprep.subr.bf16.mxu0 %v2095_v1 }
  0xb0   : > { %1663 = vmatpush3.bf16.msra.mxu0 %v1809_v37  ;;  %v1849_v37 = vld [vmem:[#allocation12] sm:$0xff]  }
 0x153   : > { %v676_v54 = vpop.f32.mrf.mxu0 }
 0x154   : > { %v677_v62 = vadd.f32 %v676_v54, %v505_v58  ;;  %v1815_v54 = vld [vmem:[#allocation10 + $0x64] ss:$8 sps:$4 sm:$0xff]  }
 0x155   : > { %v678_v56 = vpop.f32.mrf.mxu0 }
 0x156   : > { %v679_v57 = vadd.f32 %v678_v56, %v509_v53  ;;  %v723_v63 = vpack.c.bf16 %v677_v62, %v677_v62  ;;  %v1812_v53 = vld [vmem:[#allocation10 + $0x74] ss:$8 sps:$4 sm:$0xff]   ;;  %v1813_v56 = vld [vmem:[#allocation10 + $0x60] ss:$8 sps:$4 sm:$0xff]   ;;  %v1816_v62 = vld [vmem:[#allocation10 + $0x50] ss:$8 sps:$4 sm:$0xff]  }
 0x157   : > { %v680_v59 = vpop.f32.mrf.mxu0 }
 0x158   : > { %v724_v60 = vpack.c.bf16 %v679_v57, %v679_v57 }
 0x159   : > { %v681_v61 = vpop.f32.mrf.mxu0  ;;  %v717_v4 = vpop.f32.mrf.mxu1 }
 0x15a   : > { %1637 = vmatpush3.bf16.xpose.msra.mxu1 %v724_v60  ;;  %v718_v5 = vadd.f32 %v717_v4, %v513_v3  ;;  %v1818_v61 = vld [vmem:[#allocation10 + $0x54] ss:$8 sps:$4 sm:$0xff]   ;;  %v1822_v3 = vld [vmem:[#allocation10 + $0x30] ss:$8 sps:$4 sm:$0xff]   ;;  %v1827_v4 = vld [vmem:[#allocation10 + $0x24] ss:$8 sps:$4 sm:$0xff]  }
 0x15b   : > { %1642 = vmatprep.subr.bf16.mxu1 %v2095_v1  ;;  %v1634_v6 = vpop.f32.mrf.mxu1 }
 0x15c   : > { %v784_v7 = vpack.c.bf16 %v718_v5, %v718_v5  ;;  %v1825_v5 = vld [vmem:[#allocation10 + $0x20] ss:$8 sps:$4 sm:$0xff]   ;;  %v1830_v6 = vld [vmem:[#allocation10 + $0x14] ss:$8 sps:$4 sm:$0xff]  }
 0x15d   : > { %v720_v8 = vpop.f32.mrf.mxu1 }
 0x15e   : > { %v789_v9 = vsel %vm454_vm3, %v784_v7, 0  ;;  %v1828_v7 = vld [vmem:[#allocation10 + $0x10] ss:$8 sps:$4 sm:$0xff]   ;;  %v1833_v8 = vld [vmem:[#allocation10 + $0x4] ss:$8 sps:$4 sm:$0xff]  }
 0x15f   : > { %v1635_v10 = vpop.f32.mrf.mxu1 }
 0x161   : > { %1639 = vmatmul.mubr.bf16.vlgmr.msra.gmra.mxu1 %v723_v63  ;;  %v1821_v63 = vld [vmem:[#allocation10 + $0x44] ss:$8 sps:$4 sm:$0xff]  }
 0x162   : > { %1644 = vmatprep.mubr.msk.bf16.mxu1 %vm2096_vm7, %v2095_v1  ;;  %1643 = vmatpush3.bf16.msra.mxu1 %v789_v9  ;;  %v851_v1 = vrot.slane %v2332_v55, %v850_v44  ;;  %v1831_v9 = vld [vmem:[#allocation10] ss:$8 sps:$4 sm:$0xff]  }
 0x163   : > { %1068 = vmatprep.subr.bf16.mxu1 %v1812_v53 }
 0x221   : > { %v765_v15 = vpop.f32.mrf.mxu1 }
 0x222   : > { %v766_v16 = vadd.f32 %v765_v15, %v729_v14  ;;  %v960_v14 = vsub.s32 5, %v2320_v50  ;;  %v956_v15 = vrot.slane %v2332_v55, %v955_v13 }
 0x223   : > { %v1640_v17 = vpop.f32.mrf.mxu1 }
 0x224   : > { %v772_v18 = vsel %vm771_vm8, %v766_v16, -inf }
 0x225   : > { %773 = vmax.xlane.f32.xlu0 %v772_v18  ;;  %v768_v19 = vpop.f32.mrf.mxu1  ;;  %v961_v18 = vrot.slane %v2332_v55, %v960_v14  ;;  %v467_v14 = vld [vmem:[%s393_s30] sm:$0xff] }
 0x227   : > { %v1641_v20 = vpop.f32.mrf.mxu1 }
 0x2ae   : > { %v774_v21 = vpop.xlane.xlu0 %773 }
 0x2af   : > { %v775_v22 = vsub.f32 %v766_v16, %v774_v21 }
 0x2b1   : > { %v776_v23 = vmul.f32 1.442695, %v775_v22  ;;  %v1834_v22 = vld [vmem:[#allocation12 + $0x78] sm:$0xff]  }
 0x2b2   : > { %1594 = vmatprep.subr.bf16.mxu0 %v1834_v22 }
 0x2b3   : > { %1850 = vpow2.f32 %v776_v23  ;;  %v1835_v23 = vld [vmem:[#allocation12 + $0x38] sm:$0xff]  }
 0x2c0   : > { %v1851_v24 = vpop.eup %1850 }
 0x2c1   : > { %v778_v25 = vsel %vm771_vm8, %v1851_v24, 0.0 }
 0x2c2   : > { %779 = vadd.xlane.f32.xlu0 %v778_v25  ;;  %v1837_v25 = vld [vmem:[#allocation12 + $0x30] sm:$0xff]  }
 0x34b   : > { %v780_v33 = vpop.xlane.xlu0 %779 }
 0x34c   : > { %1852 = vrcp.f32 %v780_v33  ;;  %v1845_v33 = vld [vmem:[#allocation12 + $0x10] sm:$0xff]  }
 0x359   : > { %v1853_v34 = vpop.eup %1852 }
 0x35a   : > { %v782_v35 = vmul.f32 %v1853_v34, %v1851_v24  ;;  %v1836_v24 = vld [vmem:[#allocation12 + $0x70] sm:$0xff]   ;;  %v1846_v34 = vld [vmem:[#allocation12 + $0x48] sm:$0xff]  }
 0x35c   : > { %v783_v36 = vpack.c.bf16 %v782_v35, %v782_v35  ;;  %v1847_v35 = vld [vmem:[#allocation12 + $0x8] sm:$0xff]  }
 0x35e   : > { %1645 = vmatmul.mubr.msk.bf16.vlgmr.msra.gmra.mxu1 %vm771_vm8, %v783_v36  ;;  %v1848_v36 = vld [vmem:[#allocation12 + $0x40] sm:$0xff]  }
 0x35f   : > { %1100 = vmatprep.mubr.bf16.mxu1 %v2094_v0  ;;  %1069 = vmatpush1.bf16.msra.mxu1 %v1810_v52 }
 0x360   : > { %1070 = vmatprep.subr.bf16.mxu1 %v1815_v54 }
 0x363   : > { %1071 = vmatpush1.bf16.msra.mxu1 %v1813_v56 }
 0x364   : > { %1072 = vmatprep.subr.bf16.mxu1 %v1818_v61 }
 0x367   : > { %1073 = vmatpush1.bf16.msra.mxu1 %v1816_v62 }
 0x368   : > { %1074 = vmatprep.subr.bf16.mxu1 %v1821_v63 }
 0x41e   : > { %v825_v38 = vpop.f32.mrf.mxu1 }
 0x41f   : > { %v831_v39 = vpack.c.bf16 %v825_v38, %v825_v38  ;;  %v982_v38 = vsub.s32 2, %v2320_v50 }
 0x420   : > { %v1646_v40 = vpop.f32.mrf.mxu1 }
 0x421   : > { %1665 = vmatmul.mubr.bf16.vlgmr.msra.gmra.mxu0 %v831_v39  ;;  %v983_v39 = vrot.slane %v2332_v55, %v982_v38  ;;  %v987_v40 = vrot.slane %v2325_v51, %v982_v38 }
 0x422   : > { %v828_v41 = vpop.f32.mrf.mxu1  ;;  %1595 = vmatpush3.bf16.msra.mxu0 %v1835_v23 }
 0x423   : > { %1596 = vmatprep.subr.bf16.mxu0 %v1836_v24 }
 0x424   : > { %v1647_v42 = vpop.f32.mrf.mxu1 }
 0x426   : > { %1597 = vmatpush3.bf16.msra.mxu0 %v1837_v25 }
 0x427   : > { %1598 = vmatprep.subr.bf16.mxu0 %v1838_v26 }
 0x42a   : > { %1599 = vmatpush3.bf16.msra.mxu0 %v1839_v27 }
 0x42b   : > { %1600 = vmatprep.subr.bf16.mxu0 %v1840_v28 }
 0x42e   : > { %1601 = vmatpush3.bf16.msra.mxu0 %v1841_v29 }
 0x42f   : > { %1602 = vmatprep.subr.bf16.mxu0 %v1842_v30  ;;  %v1315_v30 = vsub.s32 6, %v2320_v50 }
 0x432   : > { %1603 = vmatpush3.bf16.msra.mxu0 %v1843_v31  ;;  %v1320_v31 = vsub.s32 7, %v2320_v50 }
 0x433   : > { %1604 = vmatprep.subr.bf16.mxu0 %v1844_v32  ;;  %v1316_v32 = vrot.slane %v2332_v55, %v1315_v30 }
 0x436   : > { %1605 = vmatpush3.bf16.msra.mxu0 %v1845_v33 }
 0x437   : > { %1606 = vmatprep.subr.bf16.mxu0 %v1846_v34 }
 0x43a   : > { %1607 = vmatpush3.bf16.msra.mxu0 %v1847_v35  ;;  %v1321_v35 = vrot.slane %v2332_v55, %v1320_v31 }
 0x43b   : > { %1608 = vmatprep.subr.bf16.mxu0 %v1848_v36 }
 0x43e   : > { %1609 = vmatpush3.bf16.msra.mxu0 %v1849_v37 }
 0x4e1   : > { %v934_v45 = vpop.f32.mrf.mxu0 }
 0x4e2   : > { %v935_v46 = vadd.f32 %v934_v45, %v851_v1 }
 0x4e3   : > { %v1666_v47 = vpop.f32.mrf.mxu0 }
 0x4e4   : > { %v940_v48 = vadd.f32 %v935_v46, %v2304_v43  ;;  %v1819_v43 = vld [vmem:[#allocation10 + $0x40] ss:$8 sps:$4 sm:$0xff]  }
 0x4e5   : > { %v937_v49 = vpop.f32.mrf.mxu0  ;;  %1075 = vmatpush1.bf16.msra.mxu1 %v1819_v43 }
 0x4e6   : > { %941 = vadd.xlane.f32.xlu1 %v940_v48  ;;  %1076 = vmatprep.subr.bf16.mxu1 %v1824_v2 }
 0x4e7   : > { %v1667_v0 = vpop.f32.mrf.mxu0 }
 0x4e9   : > { %1077 = vmatpush1.bf16.msra.mxu1 %v1822_v3 }
 0x4ea   : > { %1078 = vmatprep.subr.bf16.mxu1 %v1827_v4 }
 0x4ed   : > { %1079 = vmatpush1.bf16.msra.mxu1 %v1825_v5  ;;  %v1163_v5 = vsub.s32 3, %v2320_v50 }
 0x4ee   : > { %1080 = vmatprep.subr.bf16.mxu1 %v1830_v6 }
 0x4f1   : > { %1081 = vmatpush1.bf16.msra.mxu1 %v1828_v7  ;;  %v1164_v7 = vrot.slane %v2332_v55, %v1163_v5 }
 0x4f2   : > { %1082 = vmatprep.subr.bf16.mxu1 %v1833_v8 }
 0x4f5   : > { %1083 = vmatpush1.bf16.msra.mxu1 %v1831_v9 }
 0x56f   : > { %v942_v57 = vpop.xlane.xlu1 %941 }
 0x570   : > { %v944_v58 = vmul.f32 0.0078125, %v942_v57 }
 0x572   : > { %v945_v59 = vsub.f32 %v940_v48, %v944_v58 }
 0x574   : > { %v946_v60 = vmul.f32 %v945_v59, %v945_v59 }
 0x576   : > { %947 = vadd.xlane.f32.xlu1 %v946_v60 }
 0x5ff   : > { %v948_v10 = vpop.xlane.xlu1 %947 }
 0x600   : > { %v949_v11 = vmul.f32 0.0078125, %v948_v10 }
 0x602   : > { %v950_v12 = vadd.f32 1e-05, %v949_v11 }
 0x604   : > { %1854 = vrsqrt.f32 %v950_v12 }
 0x611   : > { %v1855_v16 = vpop.eup %1854 }
 0x612   : > { %v952_v17 = vmul.f32 %v1855_v16, %v945_v59 }
 0x614   : > { %v957_v19 = vmul.f32 %v956_v15, %v952_v17  ;;  %v1336_v15 = vsel %vm1335_vm9, %v467_v14, 0.0 }
 0x615   : > { %v1337_v16 = vrot.slane %v1336_v15, 4 }
 0x616   : > { %v2368_v20 = vadd.f32 %v961_v18, %v957_v19 }
 0x617   : > { %v1338_v18 = vadd.f32 %v1337_v16, %v1336_v15 }
 0x618   : > { %v963_v21 = vpack.c.bf16 %v2368_v20, %v2368_v20 }
 0x619   : > { %v1339_v22 = vrot.slane %v1338_v18, 2 }
 0x61a   : > { %1101 = vmatmul.mubr.bf16.vlgmr.msra.gmra.mxu1 %v963_v21 }
 0x61b   : > { %v1340_v24 = vadd.f32 %v1339_v22, %v1338_v18 }
 0x6da   : > { %v1102_v41 = vpop.f32.mrf.mxu1 }
 0x6db   : > { %v1103_v42 = vadd.f32 %v1102_v41, %v983_v39 }
 0x6dc   : > { %v1104_v44 = vpop.f32.mrf.mxu1 }
 0x6dd   : > { %v1109_v1 = vmul.f32 %v1103_v42, %v1103_v42  ;;  %v1105_v45 = vadd.f32 %v1104_v44, %v987_v40 }
 0x6de   : > { %v1106_v46 = vpop.f32.mrf.mxu1 }
 0x6df   : > { %v1111_v47 = vmul.f32 %v1109_v1, %v1103_v42  ;;  %v1110_v48 = vmul.f32 %v1105_v45, %v1105_v45 }
 0x6e0   : > { %v1107_v49 = vpop.f32.mrf.mxu1 }
 0x6e1   : > { %v1113_v0 = vmul.f32 0.044715, %v1111_v47  ;;  %v1112_v52 = vmul.f32 %v1110_v48, %v1105_v45 }
 0x6e3   : > { %v1115_v53 = vadd.f32 %v1113_v0, %v1103_v42  ;;  %v1114_v54 = vmul.f32 0.044715, %v1112_v52 }
 0x6e5   : > { %v1117_v56 = vmul.f32 0.7978846, %v1115_v53  ;;  %v1116_v57 = vadd.f32 %v1114_v54, %v1105_v45 }
 0x6e7   : > { %1856 = vtanh.f32 %v1117_v56  ;;  %v1118_v58 = vmul.f32 0.7978846, %v1116_v57 }
 0x6e9   : > { %1858 = vtanh.f32 %v1118_v58 }
 0x6f4   : > { %v1857_v59 = vpop.eup %1856 }
 0x6f5   : > { %v1121_v51 = vadd.f32 1.0, %v1857_v59 }
 0x6f6   : > { %v1859_v60 = vpop.eup %1858 }
 0x6f7   : > { %v1122_v61 = vadd.f32 1.0, %v1859_v60  ;;  %v1123_v62 = vmul.f32 0.5, %v1121_v51 }
 0x6f9   : > { %v1124_v43 = vmul.f32 0.5, %v1122_v61  ;;  %v1125_v63 = vmul.f32 %v1123_v62, %v1103_v42 }
 0x6fb   : > { %v1126_v2 = vmul.f32 %v1124_v43, %v1105_v45  ;;  %v1127_v4 = vpack.c.bf16 %v1125_v63, %v1125_v63 }
 0x6fd   : > { %v1128_v3 = vpack.c.bf16 %v1126_v2, %v1126_v2 }
 0x6ff   : > { %1293 = vmatprep.mubr.bf16.mxu0 %v1128_v3 }
 0x700   : > { %1294 = vmatmul.mubr.bf16.vlgmr.msra.gmra.mxu0 %v1127_v4 }
 0x7c0   : > { %v1610_v6 = vpop.f32.mrf.mxu0 }
 0x7c2   : > { %v1611_v8 = vpop.f32.mrf.mxu0 }
 0x7c3   : > { %v1612_v9 = vadd.f32 %v1611_v8, %v1610_v6 }
 0x7c4   : > { %v1613_v10 = vpop.f32.mrf.mxu0 }
 0x7c5   : > { %v1296_v11 = vadd.f32 %v1612_v9, %v1164_v7 }
 0x7c6   : > { %v1614_v12 = vpop.f32.mrf.mxu0 }
 0x7c7   : > { %v1301_v13 = vadd.f32 %v1296_v11, %v2368_v20  ;;  %v1341_v20 = vrot.slane %v1340_v24, 1 }
 0x7c9   : > { %1302 = vadd.xlane.f32.xlu0 %v1301_v13  ;;  %v1342_v25 = vadd.f32 %v1341_v20, %v1340_v24 }
 0x7cb   : > { %v1343_v26 = vmax.f32 %v1342_v25, 1e-09 }
 0x7df   : > { %1325 = vperm.xlu0 %1768, %v467_v14  }
 0x852   : > { %v1303_v17 = vpop.xlane.xlu0 %1302 }
 0x853   : > { %v1304_v19 = vmul.f32 0.0078125, %v1303_v17 }
 0x855   : > { %v1305_v21 = vsub.f32 %v1301_v13, %v1304_v19 }
 0x857   : > { %v1306_v23 = vmul.f32 %v1305_v21, %v1305_v21 }
 0x859   : > { %1307 = vadd.xlane.f32.xlu1 %v1306_v23 }
 0x85a   : > { %v1326_v38 = vpop.permute.xlu0 %1325 }
 0x86a   : > { %1346 = vperm.xlu1 %1769, %v1343_v26  }
 0x8e2   : > { %v1308_v27 = vpop.xlane.xlu1 %1307 }
 0x8e3   : > { %v1309_v28 = vmul.f32 0.0078125, %v1308_v27 }
 0x8e5   : > { %v1310_v29 = vadd.f32 1e-05, %v1309_v28 }
 0x8e6   : > { %v1347_v36 = vpop.permute.xlu1 %1346 }
 0x8e7   : > { %1860 = vrsqrt.f32 %v1310_v29 }
 0x8e8   : > { %1862 = vrcp.f32 %v1347_v36 }
 0x8f4   : > { %v1861_v33 = vpop.eup %1860 }
 0x8f5   : > { %v1312_v34 = vmul.f32 %v1861_v33, %v1305_v21  ;;  %v1863_v45 = vpop.eup %1862 }
 0x8f7   : > { %v1317_v37 = vmul.f32 %v1316_v32, %v1312_v34 }
 0x8f9   : > { %v1322_v39 = vadd.f32 %v1321_v35, %v1317_v37 }
 0x8fb   : > { %v1328_v40 = vmul.f32 %v1326_v38, %v1322_v39 }
 0x8fd   : > { %v1329_v41 = vrot.slane %v1328_v40, 4 }
 0x8ff   : > { %v1330_v42 = vadd.f32 %v1329_v41, %v1328_v40 }
 0x901   : > { %v1331_v44 = vrot.slane %v1330_v42, 2 }
 0x903   : > { %v1332_v1 = vadd.f32 %v1331_v44, %v1330_v42 }
 0x905   : > { %v1333_v50 = vrot.slane %v1332_v1, 1 }
 0x907   : > { %v1334_v46 = vadd.f32 %v1333_v50, %v1332_v1 }
 0x909   : > { %v1350_v47 = vmul.f32 %v1863_v45, %v1334_v46 }
 0x90b   : > { %1351 = vst [vmem:[%s386_s11] sm:$0x1] %v1350_v47 }
 0x90c   : > { %2019 = shalt.err (!%p2016_p2)
}
 0x90d   : > { %s2020_s28 = scalar_lea.hbm %s1363_s29, 16  ;;  %s2024_s12 = scalar_lea.hbm %s2429_s9, 32 }
 0x90e   : > { %p2021_p4 = scmp.ne.s32.totalorder %s1363_s29, %s2020_s28  ;;  %p2025_p5 = scmp.lt.s32.totalorder %s1363_s29, %s2429_s9 }
 0x90f   : > { %p2026_p3 = scmp.lt.s32.totalorder %s2024_s12, %s2020_s28 }
 0x910   : > { %p2022_p11 = pnand %p2021_p4, %p2189_p10 }
 0x911   : > { %p2027_p1 = por %p2026_p3, %p2025_p5 }
 0x912   : > { %p2023_p0 = pneg %p2022_p11 }
 0x914   : > { %p2028_p8 = pnand %p2027_p1, %p2023_p0 }
 0x916   : > { %2031 = shalt.err (!%p2028_p8)
}
 0x917   : > { %1688 = dma.vmem_to_hbm [thread:$0]  (%p2189_p10), %s1366_s20, 16, %s1363_s29, %s1353_s27  }
 0x918 PF: > { %p1720_p6 = scmp.ge.s32.totalorder %s2080_s16, 2  ;;  %s1377_s21 = sand.u32 1, %s2068_s14  }
 0x919   : > { %p2443_p7 = scmp.ne.s32.totalorder %s2433_s24, 0  ;;  %s1378_s10 = scalar_lea.sflag [#allocation6], %s1377_s21 }
 0x91b   : > { %p1707_p9 = pnand %p1720_p6, %p2443_p7 }
 0x91d   : > { %p1708_p12 = pneg %p1707_p9 }
 0x91f   : > { %2063 = dma.done.wait (%p1708_p12), %s1378_s10, 16  }
 0x920   : > { %2065 = vsyncadd (%p1708_p12), %s1378_s10, 4294967280  ;;  %s2444_s22 = sld [smem:[#allocation19_spill]]  ;;  %p28_p13 = scmp.ge.s32.totalorder %s2176_s19, 4  }
 0x921   : > { %s2445_s14 = smov %s2072_s0  ;;  %s2446_s0 = smov %s2076_s15 }
 0x922   : > { %s2448_s16 = smov %s2176_s19  ;;  %30 = sbr.rel (!%p28_p13) target bundleno = 21 (0x15), region = 119 }
 0x926   : > { %s2447_s15 = smov %s2444_s22 }
 0x927   :  { %1382 = vsyncpa [#allocation5], 1 }
 0x928   :  { %1384 = vsyncpa [#allocation5 + $0x1], 1 }
 0x929   :  { %1385 = vsyncpa [#allocation8], 1 }
 0x92a   :  { %1386 = vsyncpa [#allocation11], 1 }
 0x92b   :  { %1387 = vsyncpa [#allocation6], 1 }
 0x92c   :  { %1389 = vsyncpa [#allocation6 + $0x1], 1 }

</bundles_post_ra>
